<compile_context>
chip_gen: v7x
topology: tpu7x:2x2x1
jax: 0.10.0
libtpu: 0.0.40
codegen_flags: <defaults>
</compile_context>

<pallas_src>
import functools

import jax
import jax.numpy as jnp
from jax.experimental import pallas as pl
from jax.experimental.pallas import tpu as pltpu

BN_EPS = 1e-5


def _round_up(n, m):
    return ((n + m - 1) // m) * m


def etdfnn_kernel(x_ref, w1_ref, b1_ref, w2_ref, b2_ref, w3_ref, b3_ref, out_ref,
                  *, tanh_bf16=False):
    # x tile (TB, F); cast in-register to the weight dtype (bf16 MXU path) so
    # the f32 input is streamed from HBM only once, with no wrapper-side copy.
    x = x_ref[...].astype(w1_ref.dtype)

    # fc1 (eval-mode BatchNorm already folded into w1/b1); f32 accumulation.
    h = jnp.dot(x, w1_ref[...], preferred_element_type=jnp.float32) + b1_ref[...]

    # tanh on the EUP. Optional bf16 tanh (v6e/v7x only; v5e's EUP has no bf16).
    if tanh_bf16:
        h = jnp.tanh(h.astype(jnp.bfloat16)).astype(jnp.float32)
    else:
        h = jnp.tanh(h)

    # dropout(p=0.3) is identity in eval mode.
    # TODO(synk): training-mode dropout (stochastic mask via pltpu.prng_*) omitted.

    # fc2 + relu; bf16 MXU inputs, f32 accumulation and elementwise.
    h = jnp.dot(h.astype(w2_ref.dtype), w2_ref[...],
                preferred_element_type=jnp.float32) + b2_ref[...]
    h = jnp.maximum(h, 0.0)

    # output layer H -> 1 as a VPU multiply + lane (XLU) reduce against the
    # (1, Hp) w3 row; result written as a lane-dense (1, TB) row.
    logits = jnp.sum(h * w3_ref[...], axis=-1)[None, :] + b3_ref[...]
    out_ref[...] = jax.nn.sigmoid(logits)


def prepare_params(params, compute_dtype=jnp.bfloat16):
    """One-time parameter transform (call once, reuse across forward calls):
    folds eval-mode BatchNorm into fc1, pads the hidden dim to a 128-lane
    multiple, and casts the MXU weights to `compute_dtype` (bf16 recommended on
    v5e/v6e/v7x; biases, w3 and all elementwise math stay f32)."""
    F, H = params["w1"].shape
    inv_std = jax.lax.rsqrt(params["var"] + BN_EPS)                 # (1, H)
    scale = params["gamma"] * inv_std                               # (1, H)
    w1 = params["w1"] * scale                                       # column-scaled (F, H)
    b1 = (params["b1"] - params["mean"]) * scale + params["beta"]   # (1, H)

    Hp = _round_up(H, 128)
    cdt = compute_dtype
    return {
        "w1": jnp.zeros((F, Hp), cdt).at[:, :H].set(w1.astype(cdt)),
        "b1": jnp.zeros((1, Hp), jnp.float32).at[:, :H].set(b1),
        "w2": jnp.zeros((Hp, Hp), cdt).at[:H, :H].set(params["w2"].astype(cdt)),
        "b2": jnp.zeros((1, Hp), jnp.float32).at[:, :H].set(params["b2"]),
        "w3": jnp.zeros((1, Hp), jnp.float32).at[:, :H].set(params["w3"].reshape(1, H)),
        "b3": params["b3"].reshape(1, 1).astype(jnp.float32),
    }


@functools.partial(jax.jit, static_argnames=("block_b", "tanh_bf16"))
def etdfnn_forward(x, prepared, *, block_b=512, tanh_bf16=False):
    """x: (B, F) float32. prepared: dict from prepare_params (folded + padded)."""
    B, F = x.shape
    Fw, Hp = prepared["w1"].shape
    assert Fw == F, "prepared params do not match input feature size"

    # ---- Batch tile ----------------------------------------------------------
    TB = min(_round_up(block_b, 8), _round_up(B, 8))
    n_tiles = pl.cdiv(B, TB)
    # v7x megacore: prefer an even (>=2) number of batch tiles when halving the
    # tile actually balances the two TensorCores; never grid-pad tiny batches.
    if n_tiles % 2 == 1 and TB >= 16:
        half = _round_up((TB + 1) // 2, 8)
        if pl.cdiv(B, half) % 2 == 0:
            TB = half
            n_tiles = pl.cdiv(B, TB)

    # Weights/biases: constant index_map (DMA'd once, stay resident) and
    # single-buffered to halve their VMEM footprint. x/out keep the default
    # double buffering so the batch stream stays pipelined.
    def resident(shape):
        return pl.BlockSpec(shape, lambda i: (0, 0), pipeline_mode=pl.Buffered(1))

    in_specs = [
        pl.BlockSpec((TB, F), lambda i: (i, 0)),    # x tile (unpadded; partial last tile OK)
        resident((F, Hp)),                          # w1 (BN-folded)
        resident((1, Hp)),                          # b1 (BN-folded)
        resident((Hp, Hp)),                         # w2
        resident((1, Hp)),                          # b2
        resident((1, Hp)),                          # w3 row
        resident((1, 1)),                           # b3
    ]
    # Lane-dense output: one (1, TB) row per batch tile.
    out_specs = pl.BlockSpec((1, TB), lambda i: (i, 0))

    # ---- Explicit VMEM budget (v7x: 64 MiB/TC; v5e scoped default: 16 MiB) ---
    w_bytes = sum(int(a.size) * a.dtype.itemsize for a in prepared.values())
    x_bytes = 2 * TB * F * x.dtype.itemsize          # double-buffered x stream
    o_bytes = 2 * TB * 4                             # double-buffered out rows
    tmp_bytes = 4 * TB * Hp * 4                      # f32 intermediates headroom
    est = w_bytes + x_bytes + o_bytes + tmp_bytes
    vmem_limit = int(min(max(2 * est, 32 * 1024 * 1024), 64 * 1024 * 1024))

    cost = pl.CostEstimate(
        flops=2 * B * (F * Hp + Hp * Hp + Hp),
        transcendentals=B * (Hp + 1),                # tanh + sigmoid
        bytes_accessed=B * F * x.dtype.itemsize + w_bytes + B * 4,
    )

    out = pl.pallas_call(
        functools.partial(etdfnn_kernel, tanh_bf16=tanh_bf16),
        out_shape=jax.ShapeDtypeStruct((n_tiles, TB), jnp.float32),
        grid=(n_tiles,),
        in_specs=in_specs,
        out_specs=out_specs,
        compiler_params=pltpu.CompilerParams(
            dimension_semantics=("parallel",),       # batch tiles shard across v7x's 2 TCs
            vmem_limit_bytes=vmem_limit,
        ),
        cost_estimate=cost,
    )(x, prepared["w1"], prepared["b1"], prepared["w2"], prepared["b2"],
      prepared["w3"], prepared["b3"])

    # Row-major flatten matches batch order (tile i covers rows [i*TB, (i+1)*TB)).
    return out.reshape(-1)[:B].reshape(B, 1)


def init_params(key, input_size, hidden_size):
    """Deterministic synthetic parameters with the shapes ETDFNNBinary implies."""
    ks = jax.random.split(key, 8)
    return {
        # fc1: nn.Linear(input_size, hidden_size), stored transposed (in, out)
        "w1": jax.random.normal(ks[0], (input_size, hidden_size), jnp.float32) * 0.1,
        "b1": jax.random.normal(ks[1], (1, hidden_size), jnp.float32) * 0.1,
        # bn1: nn.BatchNorm1d(hidden_size)
        "gamma": 1.0 + 0.05 * jax.random.normal(ks[2], (1, hidden_size), jnp.float32),
        "beta": 0.05 * jax.random.normal(ks[3], (1, hidden_size), jnp.float32),
        "mean": 0.1 * jax.random.normal(ks[4], (1, hidden_size), jnp.float32),
        "var": jnp.abs(1.0 + 0.1 * jax.random.normal(ks[5], (1, hidden_size), jnp.float32)),
        # fc2: nn.Linear(hidden_size, hidden_size)
        "w2": jax.random.normal(ks[6], (hidden_size, hidden_size), jnp.float32) * 0.1,
        "b2": jnp.zeros((1, hidden_size), jnp.float32),
        # output: nn.Linear(hidden_size, 1)
        "w3": jax.random.normal(ks[7], (hidden_size, 1), jnp.float32) * 0.1,
        "b3": jnp.zeros((1, 1), jnp.float32),
    }


def reference_forward(x, p):
    """Pure-JAX reference (unfolded BN, eval mode) for correctness check."""
    h = x @ p["w1"] + p["b1"]
    h = (h - p["mean"]) * jax.lax.rsqrt(p["var"] + BN_EPS) * p["gamma"] + p["beta"]
    h = jnp.tanh(h)
    h = jnp.maximum(h @ p["w2"] + p["b2"], 0.0)
    return jax.nn.sigmoid(h @ p["w3"] + p["b3"])


if __name__ == "__main__":
    key = jax.random.PRNGKey(0)
    batch, input_size, hidden_size = 8, 16, 32

    kx, kp = jax.random.split(key)
    x = jax.random.normal(kx, (batch, input_size), jnp.float32)
    params = init_params(kp, input_size, hidden_size)
    ref = reference_forward(x, params)

    # f32 MXU path: tight tolerance.
    prep_f32 = prepare_params(params, compute_dtype=jnp.float32)
    out_f32 = jax.block_until_ready(etdfnn_forward(x, prep_f32))
    assert out_f32.shape == (batch, 1)
    assert jnp.allclose(out_f32, ref, atol=1e-5, rtol=1e-4), "f32 mismatch vs reference"

    # bf16 MXU path (recommended default on v5e/v6e/v7x): looser tolerance.
    prep_bf16 = prepare_params(params)  # compute_dtype=jnp.bfloat16
    out_bf16 = jax.block_until_ready(etdfnn_forward(x, prep_bf16))
    assert out_bf16.shape == (batch, 1)
    assert jnp.allclose(out_bf16, ref, atol=2e-2, rtol=2e-2), "bf16 mismatch vs reference"

    print("KERNEL_OK")
</pallas_src>

<mosaic_0001>
module attributes {stable_mosaic.version = 11 : i64} {
  func.func @etdfnn_kernel(%arg0: i32, %arg1: memref<8x16xf32, #tpu.memory_space<vmem>>, %arg2: memref<16x128xf32, #tpu.memory_space<vmem>>, %arg3: memref<1x128xf32, #tpu.memory_space<vmem>>, %arg4: memref<128x128xf32, #tpu.memory_space<vmem>>, %arg5: memref<1x128xf32, #tpu.memory_space<vmem>>, %arg6: memref<1x128xf32, #tpu.memory_space<vmem>>, %arg7: memref<1x1xf32, #tpu.memory_space<vmem>>, %arg8: memref<1x8xf32, #tpu.memory_space<vmem>>) attributes {dimension_semantics = [#tpu.dimension_semantics<parallel>], iteration_bounds = array<i64: 1>, scalar_prefetch = 0 : i64, scratch_operands = 0 : i64, tpu.core_type = #tpu.core_type<tc>, window_params = [{transform_indices = @transform_0, window_bounds = array<i64: 8, 16>}, {pipeline_mode = #tpu.pipeline_mode<synchronous>, transform_indices = @transform_1, window_bounds = array<i64: 16, 128>}, {pipeline_mode = #tpu.pipeline_mode<synchronous>, transform_indices = @transform_2, window_bounds = array<i64: 1, 128>}, {pipeline_mode = #tpu.pipeline_mode<synchronous>, transform_indices = @transform_3, window_bounds = array<i64: 128, 128>}, {pipeline_mode = #tpu.pipeline_mode<synchronous>, transform_indices = @transform_4, window_bounds = array<i64: 1, 128>}, {pipeline_mode = #tpu.pipeline_mode<synchronous>, transform_indices = @transform_5, window_bounds = array<i64: 1, 128>}, {pipeline_mode = #tpu.pipeline_mode<synchronous>, transform_indices = @transform_6, window_bounds = array<i64: 1, 1>}, {transform_indices = @transform_7, window_bounds = array<i64: 1, 8>}]} {
    %c0 = arith.constant 0 : index
    %c0_0 = arith.constant 0 : index
    %0 = vector.load %arg1[%c0, %c0_0] : memref<8x16xf32, #tpu.memory_space<vmem>>, vector<8x16xf32>
    %c0_1 = arith.constant 0 : index
    %c0_2 = arith.constant 0 : index
    %1 = vector.load %arg2[%c0_1, %c0_2] : memref<16x128xf32, #tpu.memory_space<vmem>>, vector<16x128xf32>
    %cst = arith.constant dense<0.000000e+00> : vector<8x128xf32>
    %2 = tpu.matmul %0, %1, %cst {dimension_numbers = #tpu.dot_dimension_numbers<[1], [0], [0], [1], [0, 0, 1, 1], [], []>} : vector<8x16xf32>, vector<16x128xf32>, vector<8x128xf32> -> vector<8x128xf32>
    %c0_3 = arith.constant 0 : index
    %c0_4 = arith.constant 0 : index
    %3 = vector.load %arg3[%c0_3, %c0_4] : memref<1x128xf32, #tpu.memory_space<vmem>>, vector<1x128xf32>
    %4 = vector.broadcast %3 : vector<1x128xf32> to vector<8x128xf32>
    %5 = arith.addf %2, %4 : vector<8x128xf32>
    %6 = math.tanh %5 : vector<8x128xf32>
    %c0_5 = arith.constant 0 : index
    %c0_6 = arith.constant 0 : index
    %7 = vector.load %arg4[%c0_5, %c0_6] : memref<128x128xf32, #tpu.memory_space<vmem>>, vector<128x128xf32>
    %cst_7 = arith.constant dense<0.000000e+00> : vector<8x128xf32>
    %8 = tpu.matmul %6, %7, %cst_7 {dimension_numbers = #tpu.dot_dimension_numbers<[1], [0], [0], [1], [0, 0, 1, 1], [], []>} : vector<8x128xf32>, vector<128x128xf32>, vector<8x128xf32> -> vector<8x128xf32>
    %c0_8 = arith.constant 0 : index
    %c0_9 = arith.constant 0 : index
    %9 = vector.load %arg5[%c0_8, %c0_9] : memref<1x128xf32, #tpu.memory_space<vmem>>, vector<1x128xf32>
    %10 = vector.broadcast %9 : vector<1x128xf32> to vector<8x128xf32>
    %11 = arith.addf %8, %10 : vector<8x128xf32>
    %cst_10 = arith.constant 0.000000e+00 : f32
    %12 = vector.broadcast %cst_10 : f32 to vector<8x128xf32>
    %13 = arith.maximumf %11, %12 : vector<8x128xf32>
    %c0_11 = arith.constant 0 : index
    %c0_12 = arith.constant 0 : index
    %14 = vector.load %arg6[%c0_11, %c0_12] : memref<1x128xf32, #tpu.memory_space<vmem>>, vector<1x128xf32>
    %15 = vector.broadcast %14 : vector<1x128xf32> to vector<8x128xf32>
    %16 = arith.mulf %13, %15 : vector<8x128xf32>
    %cst_13 = arith.constant dense<0.000000e+00> : vector<8xf32>
    %17 = vector.multi_reduction <add>, %16, %cst_13 [1] : vector<8x128xf32> to vector<8xf32>
    %18 = vector.shape_cast %17 : vector<8xf32> to vector<1x8xf32>
    %c0_14 = arith.constant 0 : index
    %c0_15 = arith.constant 0 : index
    %19 = vector.load %arg7[%c0_14, %c0_15] : memref<1x1xf32, #tpu.memory_space<vmem>>, vector<1x1xf32>
    %20 = vector.broadcast %19 : vector<1x1xf32> to vector<1x8xf32>
    %21 = arith.addf %18, %20 : vector<1x8xf32>
    %22 = arith.negf %21 : vector<1x8xf32>
    %23 = math.exp %22 : vector<1x8xf32>
    %cst_16 = arith.constant 1.000000e+00 : f32
    %24 = vector.broadcast %cst_16 : f32 to vector<1x8xf32>
    %25 = arith.addf %24, %23 : vector<1x8xf32>
    %26 = arith.divf %24, %25 : vector<1x8xf32>
    %c0_17 = arith.constant 0 : index
    %c0_18 = arith.constant 0 : index
    %27 = vector.load %arg8[%c0_17, %c0_18] : memref<1x8xf32, #tpu.memory_space<vmem>>, vector<1x8xf32>
    tpu.vector_store %arg8[%c0_17, %c0_18], %26 {strides = array<i32>} : memref<1x8xf32, #tpu.memory_space<vmem>>, vector<1x8xf32>,
    return
  }
  func.func @transform_0(%arg0: i32) -> (i32, i32) {
    %c0_i32 = arith.constant 0 : i32
    %c0_i32_0 = arith.constant 0 : i32
    return %arg0, %c0_i32 : i32, i32
  }
  func.func @transform_1(%arg0: i32) -> (i32, i32) {
    %c0_i32 = arith.constant 0 : i32
    %c0_i32_0 = arith.constant 0 : i32
    %c0_i32_1 = arith.constant 0 : i32
    return %c0_i32, %c0_i32_0 : i32, i32
  }
  func.func @transform_2(%arg0: i32) -> (i32, i32) {
    %c0_i32 = arith.constant 0 : i32
    %c0_i32_0 = arith.constant 0 : i32
    %c0_i32_1 = arith.constant 0 : i32
    return %c0_i32, %c0_i32_0 : i32, i32
  }
  func.func @transform_3(%arg0: i32) -> (i32, i32) {
    %c0_i32 = arith.constant 0 : i32
    %c0_i32_0 = arith.constant 0 : i32
    %c0_i32_1 = arith.constant 0 : i32
    return %c0_i32, %c0_i32_0 : i32, i32
  }
  func.func @transform_4(%arg0: i32) -> (i32, i32) {
    %c0_i32 = arith.constant 0 : i32
    %c0_i32_0 = arith.constant 0 : i32
    %c0_i32_1 = arith.constant 0 : i32
    return %c0_i32, %c0_i32_0 : i32, i32
  }
  func.func @transform_5(%arg0: i32) -> (i32, i32) {
    %c0_i32 = arith.constant 0 : i32
    %c0_i32_0 = arith.constant 0 : i32
    %c0_i32_1 = arith.constant 0 : i32
    return %c0_i32, %c0_i32_0 : i32, i32
  }
  func.func @transform_6(%arg0: i32) -> (i32, i32) {
    %c0_i32 = arith.constant 0 : i32
    %c0_i32_0 = arith.constant 0 : i32
    %c0_i32_1 = arith.constant 0 : i32
    return %c0_i32, %c0_i32_0 : i32, i32
  }
  func.func @transform_7(%arg0: i32) -> (i32, i32) {
    %c0_i32 = arith.constant 0 : i32
    %c0_i32_0 = arith.constant 0 : i32
    return %arg0, %c0_i32 : i32, i32
  }
}

</mosaic_0001>

<bundles_post_ra>
// kernel: etdfnn_forward.1
= control target key start
LH: loop header
LB: loop body
LE: loop exit
PB: predicated region body
PF: predicated region fallthrough
CT: control target
= control target key end

     0   :  { %s621_s0 = inlined_call_operand.hbm [shape: f32[8,16], index: 0, kind: input, shape index: {}]   ;;  %s622_s1 = inlined_call_operand.hbm [shape: f32[16,128], index: 1, kind: input, shape index: {}]   ;;  %s623_s2 = inlined_call_operand.vmem [shape: f32[1,128], index: 2, kind: input, shape index: {}]   ;;  %s624_s3 = inlined_call_operand.hbm [shape: f32[128,128], index: 3, kind: input, shape index: {}]   ;;  %s625_s4 = inlined_call_operand.vmem [shape: f32[1,128], index: 4, kind: input, shape index: {}]   ;;  %s626_s5 = inlined_call_operand.vmem [shape: f32[1,128], index: 5, kind: input, shape index: {}]   ;;  %s627_s6 = inlined_call_operand.<no memory space> [shape: f32[1,1], index: 6, kind: input, shape index: {}]   ;;  %s628_s7 = inlined_call_operand.hbm [shape: f32[1,8], index: 7, kind: output, shape index: {}]  }
   0x1   :  { %v12_v0 = vstv %s627_s6 }
   0x2   :  { %13 = vst [vmem:[#allocation2] sm:$0x1] %v12_v0 }
   0x3   :  { %14 = vsyncpa [#allocation4], 0 }
   0x4   :  { %15 = vsyncpa [#allocation7], 0 }
   0x5   :  { %16 = vsyncpa [#allocation5], 0  ;;  %s505_s26 = smov [#allocation6]   ;;  %s411_s30 = scalar_lea.hbm %s622_s1, 256 }
   0x6   :  { %s32_s27 = sshll.u32 %s505_s26, 4  ;;  %p412_p0 = scmp.ne.s32.totalorder %s622_s1, %s411_s30  ;;  %s33_s27 = int_to_ptr.vmem [resolvable:$true] %s32_s27 }
   0x7   :  { %p415_p1 = scmp.lt.u32.totalorder %s411_s30, %s622_s1 }
   0x9   :  { %p417_p2 = pnand %p415_p1, %p412_p0 }
   0xb   :  { %420 = shalt.err (!%p417_p2)
}
   0xc   :  { %s421_s6 = scalar_lea.vmem %s33_s27, 256  ;;  %p426_p4 = scmp.lt.s32.totalorder %s33_s27, %s33_s27 }
   0xd   :  { %p422_p3 = scmp.ne.s32.totalorder %s33_s27, %s421_s6  ;;  %p427_p5 = scmp.lt.s32.totalorder %s421_s6, %s421_s6 }
   0xf   :  { %p428_p6 = por %p427_p5, %p426_p4 }
  0x11   :  { %p429_p7 = pnand %p428_p6, %p422_p3 }
  0x13   :  { %432 = shalt.err (!%p429_p7)
}
  0x14   :  { %s506_s12 = smov 128   ;;  %s507_s13 = smov 8  }
  0x15   :  { %38 = dma.hbm_to_vmem [thread:$0]  %s622_s1, 256, %s33_s27, [#allocation7], %s506_s12, %s506_s12, %s507_s13  }
  0x16   :  { %s508_s16 = smov [#allocation3]   ;;  %s509_s18 = smov [#allocation8]  }
  0x17   :  { %s23_s17 = sshll.u32 %s508_s16, 4  ;;  %s46_s19 = sshll.u32 %s509_s18, 4  ;;  %s24_s17 = int_to_ptr.vmem [resolvable:$true] %s23_s17  ;;  %s47_s19 = int_to_ptr.vmem [resolvable:$true] %s46_s19 }
  0x18   :  { %s433_s22 = scalar_lea.hbm %s621_s0, 128 }
  0x19   :  { %p434_p8 = scmp.ne.s32.totalorder %s621_s0, %s433_s22  ;;  %p437_p9 = scmp.lt.u32.totalorder %s433_s22, %s621_s0 }
  0x1b   :  { %p439_p10 = pnand %p437_p9, %p434_p8 }
  0x1d   :  { %442 = shalt.err (!%p439_p10)
}
  0x1e   :  { %s443_s1 = scalar_lea.vmem %s24_s17, 128  ;;  %p448_p12 = scmp.lt.s32.totalorder %s24_s17, %s24_s17 }
  0x1f   :  { %p444_p11 = scmp.ne.s32.totalorder %s24_s17, %s443_s1  ;;  %p449_p13 = scmp.lt.s32.totalorder %s443_s1, %s443_s1 }
  0x21   :  { %p450_p0 = por %p449_p13, %p448_p12 }
  0x23   :  { %p451_p1 = pnand %p450_p0, %p444_p11 }
  0x25   :  { %454 = shalt.err (!%p451_p1)
}
  0x26   :  { %26 = dma.hbm_to_vmem [thread:$0]  %s621_s0, 128, %s24_s17, [#allocation4]  }
  0x27   :  { %s455_s8 = scalar_lea.hbm %s624_s3, 2048 }
  0x28   :  { %p456_p2 = scmp.ne.s32.totalorder %s624_s3, %s455_s8  ;;  %p459_p3 = scmp.lt.u32.totalorder %s455_s8, %s624_s3 }
  0x2a   :  { %p461_p4 = pnand %p459_p3, %p456_p2 }
  0x2c   :  { %464 = shalt.err (!%p461_p4)
}
  0x2d   :  { %s465_s14 = scalar_lea.vmem %s47_s19, 2048  ;;  %p470_p6 = scmp.lt.s32.totalorder %s47_s19, %s47_s19 }
  0x2e   :  { %p466_p5 = scmp.ne.s32.totalorder %s47_s19, %s465_s14  ;;  %p471_p7 = scmp.lt.s32.totalorder %s465_s14, %s465_s14 }
  0x30   :  { %p472_p8 = por %p471_p7, %p470_p6 }
  0x32   :  { %p473_p9 = pnand %p472_p8, %p466_p5 }
  0x34   :  { %476 = shalt.err (!%p473_p9)
}
  0x35   :  { %52 = dma.hbm_to_vmem [thread:$0]  %s624_s3, 2048, %s47_s19, [#allocation7], %s506_s12, %s506_s12, %s507_s13  }
  0x36   :  { %499 = dma.done.wait [#allocation4], 128  }
  0x37   :  { %500 = vsyncadd [#allocation4], 4294967168 }
  0x38   :  { %501 = dma.done.wait [#allocation7], 2304  }
  0x39   :  { %502 = vsyncadd [#allocation7], 4294964992  ;;  %v510_v1 = vmov 0.0|0.0   ;;  %vm511_vm0 = vmmov 0   ;;  %v512_v2 = vmov 0.0   ;;  %v69_v3 = vld [vmem:[#allocation6] sm:$0xff]  ;;  %v263_v45 = vlaneseq }
  0x3a   :  { %367 = vmatprep.subr.bf16.mxu0 %v510_v1  ;;  %329 = vmatprep.mubr.msk.f32.mxu0 %vm511_vm0, %v512_v2  ;;  %v70_v4 = vld [vmem:[#allocation6 + $0x8] sm:$0xff]  ;;  %v153_v6 = vld [vmem:[#allocation8] sm:$0xff]  ;;  %v154_v7 = vld [vmem:[#allocation8 + $0x8] sm:$0xff]  ;;  %vm78_vm1 = vcmask 130048   ;;  %v513_v36 = vmov 0   ;;  %vm282_vm2 = vcmask 57344  }
  0x3b   :  { %370 = vmatprep.subr.bf16.mxu1 %v510_v1  ;;  %364 = vmatprep.mubr.msk.f32.mxu1 %vm511_vm0, %v512_v2  ;;  %v368_v5 = vpack.c.bf16 %v70_v4, %v69_v3  ;;  %v155_v8 = vld [vmem:[#allocation8 + $0x10] sm:$0xff]  ;;  %v371_v9 = vpack.c.bf16 %v154_v7, %v153_v6  ;;  %v156_v10 = vld [vmem:[#allocation8 + $0x18] sm:$0xff]  ;;  %v68_v11 = vld [vmem:[#allocation3] sm:$0xff]  ;;  %v264_v46 = vshrl.u32 %v263_v45, 7  ;;  %v276_v55 = vand.u32 127, %v263_v45 }
  0x3c   :  { %v374_v12 = vpack.c.bf16 %v156_v10, %v155_v8  ;;  %v157_v13 = vld [vmem:[#allocation8 + $0x20] sm:$0xff]  ;;  %v158_v14 = vld [vmem:[#allocation8 + $0x28] sm:$0xff]  ;;  %v159_v16 = vld [vmem:[#allocation8 + $0x30] sm:$0xff]  ;;  %404 = vset.pattern.permute.xlu0 %v513_v36 }
  0x3d   :  { %369 = vmatpush3.bf16.msra.mxu0 %v368_v5  ;;  %372 = vmatpush3.bf16.msra.mxu1 %v371_v9  ;;  %v377_v15 = vpack.c.bf16 %v158_v14, %v157_v13  ;;  %v160_v17 = vld [vmem:[#allocation8 + $0x38] sm:$0xff]  ;;  %v161_v19 = vld [vmem:[#allocation8 + $0x40] sm:$0xff]  ;;  %v162_v20 = vld [vmem:[#allocation8 + $0x48] sm:$0xff]  ;;  %v265_v48 = vsub.s32 0, %v264_v46  ;;  %v279_v56 = vsub.s32 %v276_v55, %v264_v46 }
  0x3e   :  { %373 = vmatprep.subr.bf16.mxu1 %v510_v1  ;;  %v380_v18 = vpack.c.bf16 %v160_v17, %v159_v16  ;;  %v383_v21 = vpack.c.bf16 %v162_v20, %v161_v19  ;;  %v163_v22 = vld [vmem:[#allocation8 + $0x50] sm:$0xff]  ;;  %v164_v23 = vld [vmem:[#allocation8 + $0x58] sm:$0xff]  ;;  %v165_v25 = vld [vmem:[#allocation8 + $0x60] sm:$0xff] }
  0x3f   :  { %v386_v24 = vpack.c.bf16 %v164_v23, %v163_v22  ;;  %v166_v26 = vld [vmem:[#allocation8 + $0x68] sm:$0xff]  ;;  %v167_v28 = vld [vmem:[#allocation8 + $0x70] sm:$0xff]  ;;  %v168_v29 = vld [vmem:[#allocation8 + $0x78] sm:$0xff] }
  0x40   :  { %330 = vmatmul.mubr.msk.f32.vlgmr.msra.gmra.mrb[0].mxu0 %vm78_vm1, %v68_v11  ;;  %v389_v27 = vpack.c.bf16 %v166_v26, %v165_v25  ;;  %v392_v30 = vpack.c.bf16 %v168_v29, %v167_v28  ;;  %v300_v31 = vld [vmem:[%s623_s2] ss:$0 sm:$0xff]  ;;  %s514_s2 = smov [#allocation9]  }
  0x41   :  { %375 = vmatpush3.bf16.msra.mxu1 %v374_v12  ;;  %v302_v37 = vld [vmem:[%s625_s4] ss:$0 sm:$0xff]  ;;  %s290_s4 = sshll.u32 %s514_s2, 4  ;;  %s291_s4 = int_to_ptr.vmem [resolvable:$true] %s290_s4 }
  0x42   :  { %376 = vmatprep.subr.bf16.mxu1 %v510_v1  ;;  %v303_v41 = vld [vmem:[%s626_s5] ss:$0 sm:$0xff]  ;;  %s477_s5 = scalar_lea.vmem %s291_s4, 16  ;;  %s481_s19 = scalar_lea.vmem %s291_s4, 32 }
  0x43   :  { %v257_v44 = vld [vmem:[#allocation2] sm:$0x1]  ;;  %p478_p10 = scmp.ne.s32.totalorder %s291_s4, %s477_s5  ;;  %p482_p11 = scmp.lt.s32.totalorder %s291_s4, %s291_s4 }
  0x44   :  { %p483_p12 = scmp.lt.s32.totalorder %s481_s19, %s477_s5 }
  0x45   :  { %378 = vmatpush3.bf16.msra.mxu1 %v377_v15 }
  0x46   :  { %379 = vmatprep.subr.bf16.mxu1 %v510_v1  ;;  %p484_p13 = por %p483_p12, %p482_p11 }
  0x48   :  { %p485_p0 = pnand %p484_p13, %p478_p10 }
  0x49   :  { %381 = vmatpush3.bf16.msra.mxu1 %v380_v18 }
  0x4a   :  { %382 = vmatprep.subr.bf16.mxu1 %v510_v1 }
  0x4d   :  { %384 = vmatpush3.bf16.msra.mxu1 %v383_v21 }
  0x4e   :  { %385 = vmatprep.subr.bf16.mxu1 %v510_v1 }
  0x51   :  { %387 = vmatpush3.bf16.msra.mxu1 %v386_v24 }
  0x52   :  { %388 = vmatprep.subr.bf16.mxu1 %v510_v1 }
  0x55   :  { %390 = vmatpush3.bf16.msra.mxu1 %v389_v27 }
  0x56   :  { %391 = vmatprep.subr.bf16.mxu1 %v510_v1 }
  0x59   :  { %393 = vmatpush3.bf16.msra.mxu1 %v392_v30 }
 0x113   :  { %v148_v32 = vpop.f32.mrb[0].mxu0 }
 0x114   :  { %v149_v33 = vadd.f32 %v300_v31, %v148_v32  ;;  %v331_v34 = vpop.f32.mrb[1].mxu0 }
 0x116   :  { %405 = vtanh.f32 %v149_v33 }
 0x120   :  { %v406_v35 = vpop.eup %405 }
 0x121   :  { %365 = vmatmul.mubr.f32.vlgmr.msra.gmra.mrb[0].mxu1 %v406_v35 }
 0x1f4   :  { %v242_v38 = vpop.f32.mrb[0].mxu1 }
 0x1f5   :  { %v243_v39 = vadd.f32 %v302_v37, %v242_v38  ;;  %v366_v40 = vpop.f32.mrb[1].mxu1 }
 0x1f7   :  { %v246_v42 = vmax.f32 %v243_v39, 0.0 }
 0x1f9   :  { %v254_v43 = vmul.f32 %v303_v41, %v246_v42 }
 0x1fb   :  { %255 = vadd.xlane.f32.xlu0 %v254_v43 }
 0x211   :  { %260 = vperm.xlu0 %404, %v257_v44  }
 0x288   :  { %v256_v47 = vpop.xlane.xlu0 %255 }
 0x290   :  { %v261_v49 = vpop.permute.xlu0 %260 }
 0x291   :  { %v266_v50 = vrot.slane %v261_v49, %v265_v48 }
 0x293   :  { %v267_v51 = vadd.f32 %v266_v50, %v256_v47 }
 0x295   :  { %v304_v52 = vmul.f32 -1.442695, %v267_v51 }
 0x297   :  { %407 = vpow2.f32 %v304_v52 }
 0x2a1   :  { %v408_v53 = vpop.eup %407 }
 0x2a2   :  { %v271_v54 = vadd.f32 1.0, %v408_v53 }
 0x2a4   :  { %409 = vrcp.f32 %v271_v54 }
 0x2ae   :  { %v410_v57 = vpop.eup %409 }
 0x2af   :  { %v280_v58 = vrot.slane %v410_v57, %v279_v56 }
 0x2b1   :  { %283 = vst.msk [vmem:[#allocation9] sm:$0x1] %vm282_vm2, %v280_v58 }
 0x2b2   :  { %488 = shalt.err (!%p485_p0)
}
 0x2b3   :  { %s489_s22 = scalar_lea.hbm %s628_s7, 16 }
 0x2b4   :  { %p490_p1 = scmp.ne.s32.totalorder %s628_s7, %s489_s22  ;;  %p493_p2 = scmp.lt.u32.totalorder %s489_s22, %s628_s7 }
 0x2b6   :  { %p495_p3 = pnand %p493_p2, %p490_p1 }
 0x2b8   :  { %498 = shalt.err (!%p495_p3)
}
 0x2b9   :  { %293 = dma.vmem_to_hbm [thread:$0]  %s291_s4, 16, %s628_s7, [#allocation5]  }
 0x2ba   :  { %503 = dma.done.wait [#allocation5], 16  }
 0x2bb   :  { %504 = vsyncadd [#allocation5], 4294967280 }
 0x2bc   :  { %297 = vsyncpa [#allocation4], 1 }
 0x2bd   :  { %298 = vsyncpa [#allocation7], 1 }
 0x2be   :  { %299 = vsyncpa [#allocation5], 1 }

</bundles_post_ra>
